<compile_context>
chip_gen: v7x
topology: tpu7x:2x2x1
jax: 0.10.0
libtpu: 0.0.40
codegen_flags: <defaults>
</compile_context>

<pallas_src>
import jax
import jax.numpy as jnp
from jax.experimental import pallas as pl
from jax.experimental.pallas import tpu as pltpu


def _round_up(n, m):
    return ((n + m - 1) // m) * m


def valuenet_kernel(x_ref, w1_ref, b1_ref, w2_ref, b2_ref, o_ref):
    # x_ref : (D, TB)    batch tile, batch on the lane axis
    # w1_ref: (H, D)     fc1 weight (PyTorch layout), VMEM-resident
    # b1_ref: (H, 1)     fc1 bias column, VMEM-resident
    # w2_ref: (H, 1)     fc2 weight column, VMEM-resident
    # b2_ref: (1, 1)     fc2 bias scalar in SMEM
    # o_ref : (1, 1, TB) lane-dense output row for this batch tile

    # fc1 on the MXU (K = D, N = TB), bias + ReLU on the VPU — all lane-dense.
    h = jnp.dot(w1_ref[...], x_ref[...], preferred_element_type=jnp.float32) + b1_ref[...]
    h = jnp.maximum(h, 0.0)                                            # (H, TB)

    # fc2: output width 1 -> skip the MXU. Broadcast-multiply by the weight column (VPU)
    # and reduce over the hidden/sublane axis (XLU), giving a lane-dense (1, TB) row.
    o_row = jnp.sum(h * w2_ref[...], axis=0, keepdims=True) + b2_ref[0, 0]   # (1, TB)
    o_ref[0] = o_row.astype(o_ref.dtype)


def prepare_params(w1, b1, w2, b2):
    """One-time layout conversion from PyTorch nn.Linear layouts (hoisted off the hot path).

    w1: (H, D), b1: (H,), w2: (1, H), b2: (1,)
      ->  w1_hd: (H, D), b1_col: (H, 1), w2_col: (H, 1), b2_s: (1, 1)
    """
    H = w1.shape[0]
    return (jnp.asarray(w1, jnp.float32),            # (H, D) — already the layout we want
            b1.reshape(H, 1).astype(jnp.float32),    # (H, 1)
            jnp.transpose(w2).astype(jnp.float32),   # (H, 1)
            b2.reshape(1, 1).astype(jnp.float32))    # (1, 1)


def _xla_forward(x, params):
    w1_hd, b1_col, w2_col, b2_s = params
    h = jax.nn.relu(x @ w1_hd.T + b1_col[:, 0])
    return h @ w2_col + b2_s


def value_net_forward(x, params, *, block_b=8192, min_pallas_batch=128):
    """x: (B, D). params: output of prepare_params. Returns (B, 1) float32."""
    w1_hd, b1_col, w2_col, b2_s = params
    B, D = x.shape
    H = w1_hd.shape[0]

    # Tiny online-RL batches: pallas_call fixed cost (~1-2us) dominates -> plain XLA.
    if B < min_pallas_batch:
        return _xla_forward(x, params)

    # --- Tile selection: TB always a multiple of 128 (lane-dense stores, legal blocks). ---
    Bp128 = _round_up(B, 128)
    TB = min(_round_up(block_b, 128), Bp128)
    # v7x megacore: if the batch spans more than one 128-lane tile, make sure G >= 2 so the
    # "parallel" batch axis shards across both TensorCores.
    if Bp128 > 128 and Bp128 <= TB:
        TB = _round_up(pl.cdiv(Bp128, 2), 128)
    Bp = _round_up(B, TB)
    G = Bp // TB

    # Batch on the lane axis: transpose once here, pad lanes to Bp.
    x_t = jnp.transpose(x)                             # (D, B)
    if Bp != B:
        x_t = jnp.pad(x_t, ((0, 0), (0, Bp - B)))      # padded cols produce garbage, sliced off

    out = pl.pallas_call(
        valuenet_kernel,
        out_shape=jax.ShapeDtypeStruct((G, 1, TB), jnp.float32),
        grid=(G,),
        in_specs=[
            pl.BlockSpec((D, TB), lambda i: (0, i)),               # x:  tiled over batch lanes
            pl.BlockSpec((H, D), lambda i: (0, 0)),                # w1: VMEM-resident
            pl.BlockSpec((H, 1), lambda i: (0, 0)),                # b1: VMEM-resident
            pl.BlockSpec((H, 1), lambda i: (0, 0)),                # w2: VMEM-resident
            pl.BlockSpec(memory_space=pltpu.MemorySpace.SMEM),     # b2: SMEM scalar
        ],
        out_specs=pl.BlockSpec((1, 1, TB), lambda i: (i, 0, 0)),   # lane-dense rows
        compiler_params=pltpu.CompilerParams(
            dimension_semantics=("parallel",),        # shard batch blocks across TCs (v7x)
            vmem_limit_bytes=8 * 1024 * 1024,         # working set << 1 MiB; leave headroom
        ),
    )(x_t, w1_hd, b1_col, w2_col, b2_s)

    # (G, 1, TB) -> (Bp, 1) is a contiguous reshape; drop padded rows.
    # (Consumers that accept a lane-dense (1, B) row could skip this relayout entirely.)
    return out.reshape(Bp, 1)[:B]


def init_params(key, input_dims, fc_dims):
    """Deterministic init matching PyTorch nn.Linear default (U(-1/sqrt(fan_in), +))."""
    k1, k2, k3, k4 = jax.random.split(key, 4)
    bound1 = 1.0 / jnp.sqrt(float(input_dims))
    bound2 = 1.0 / jnp.sqrt(float(fc_dims))
    w1 = jax.random.uniform(k1, (fc_dims, input_dims), jnp.float32, -bound1, bound1)
    b1 = jax.random.uniform(k2, (fc_dims,), jnp.float32, -bound1, bound1)
    w2 = jax.random.uniform(k3, (1, fc_dims), jnp.float32, -bound2, bound2)
    b2 = jax.random.uniform(k4, (1,), jnp.float32, -bound2, bound2)
    return w1, b1, w2, b2


def reference_forward(x, w1, b1, w2, b2):
    h = jax.nn.relu(x @ w1.T + b1)
    return h @ w2.T + b2


if __name__ == "__main__":
    # CartPole-like ValueNet: input_dims=4 (state), fc_dims=32 hidden.
    input_dims, fc_dims = 4, 32

    key = jax.random.PRNGKey(0)
    kx1, kx2, kp = jax.random.split(key, 3)
    w1, b1, w2, b2 = init_params(kp, input_dims, fc_dims)
    params = prepare_params(w1, b1, w2, b2)   # one-time layout prep, outside the hot path

    # Small batch, forced through the Pallas kernel (single 128-lane tile, G=1).
    x_small = jax.random.normal(kx1, (8, input_dims), jnp.float32)
    out_small = jax.block_until_ready(
        value_net_forward(x_small, params, min_pallas_batch=0))
    ref_small = reference_forward(x_small, w1, b1, w2, b2)
    assert out_small.shape == (8, 1), out_small.shape
    assert jnp.allclose(out_small, ref_small, atol=1e-4, rtol=1e-4), (out_small, ref_small)

    # Larger, non-multiple batch: exercises 128-aligned tiling, lane padding, resident
    # weights, and the >=2-block parallel grid axis (v7x megacore path).
    x_big = jax.random.normal(kx2, (600, input_dims), jnp.float32)
    out_big = jax.block_until_ready(value_net_forward(x_big, params, block_b=8192))
    ref_big = reference_forward(x_big, w1, b1, w2, b2)
    assert out_big.shape == (600, 1), out_big.shape
    assert jnp.allclose(out_big, ref_big, atol=1e-4, rtol=1e-4), (out_big, ref_big)

    # Tiny online-RL batch: routed to the plain XLA path (kernel overhead would dominate).
    x_tiny = x_small[:2]
    out_tiny = jax.block_until_ready(value_net_forward(x_tiny, params))
    assert jnp.allclose(out_tiny, ref_small[:2], atol=1e-4, rtol=1e-4)

    print("KERNEL_OK")
</pallas_src>

<mosaic_0001>
module attributes {stable_mosaic.version = 11 : i64} {
  func.func @valuenet_kernel(%arg0: i32, %arg1: memref<4x128xf32, #tpu.memory_space<vmem>>, %arg2: memref<32x4xf32, #tpu.memory_space<vmem>>, %arg3: memref<32x1xf32, #tpu.memory_space<vmem>>, %arg4: memref<32x1xf32, #tpu.memory_space<vmem>>, %arg5: memref<1x1xf32, #tpu.memory_space<smem>>, %arg6: memref<1x1x128xf32, #tpu.memory_space<vmem>>) attributes {dimension_semantics = [#tpu.dimension_semantics<parallel>], iteration_bounds = array<i64: 1>, scalar_prefetch = 0 : i64, scratch_operands = 0 : i64, tpu.core_type = #tpu.core_type<tc>, window_params = [{transform_indices = @transform_0, window_bounds = array<i64: 4, 128>}, {pipeline_mode = #tpu.pipeline_mode<synchronous>, transform_indices = @transform_1, window_bounds = array<i64: 32, 4>}, {pipeline_mode = #tpu.pipeline_mode<synchronous>, transform_indices = @transform_2, window_bounds = array<i64: 32, 1>}, {pipeline_mode = #tpu.pipeline_mode<synchronous>, transform_indices = @transform_3, window_bounds = array<i64: 32, 1>}, {transform_indices = @transform_4, window_bounds = array<i64: 1, 1>}, {transform_indices = @transform_5, window_bounds = array<i64: 1, 1, 128>}]} {
    %c0 = arith.constant 0 : index
    %c0_0 = arith.constant 0 : index
    %0 = vector.load %arg2[%c0, %c0_0] : memref<32x4xf32, #tpu.memory_space<vmem>>, vector<32x4xf32>
    %c0_1 = arith.constant 0 : index
    %c0_2 = arith.constant 0 : index
    %1 = vector.load %arg1[%c0_1, %c0_2] : memref<4x128xf32, #tpu.memory_space<vmem>>, vector<4x128xf32>
    %cst = arith.constant dense<0.000000e+00> : vector<32x128xf32>
    %2 = tpu.matmul %0, %1, %cst {dimension_numbers = #tpu.dot_dimension_numbers<[1], [0], [0], [1], [0, 0, 1, 1], [], []>} : vector<32x4xf32>, vector<4x128xf32>, vector<32x128xf32> -> vector<32x128xf32>
    %c0_3 = arith.constant 0 : index
    %c0_4 = arith.constant 0 : index
    %3 = vector.load %arg3[%c0_3, %c0_4] : memref<32x1xf32, #tpu.memory_space<vmem>>, vector<32x1xf32>
    %4 = vector.broadcast %3 : vector<32x1xf32> to vector<32x128xf32>
    %5 = arith.addf %2, %4 : vector<32x128xf32>
    %cst_5 = arith.constant 0.000000e+00 : f32
    %6 = vector.broadcast %cst_5 : f32 to vector<32x128xf32>
    %7 = arith.maximumf %5, %6 : vector<32x128xf32>
    %c0_6 = arith.constant 0 : index
    %c0_7 = arith.constant 0 : index
    %8 = vector.load %arg4[%c0_6, %c0_7] : memref<32x1xf32, #tpu.memory_space<vmem>>, vector<32x1xf32>
    %9 = vector.broadcast %8 : vector<32x1xf32> to vector<32x128xf32>
    %10 = arith.mulf %7, %9 : vector<32x128xf32>
    %cst_8 = arith.constant dense<0.000000e+00> : vector<128xf32>
    %11 = vector.multi_reduction <add>, %10, %cst_8 [0] : vector<32x128xf32> to vector<128xf32>
    %12 = vector.shape_cast %11 : vector<128xf32> to vector<1x128xf32>
    %c0_9 = arith.constant 0 : index
    %c0_10 = arith.constant 0 : index
    %13 = memref.load %arg5[%c0_9, %c0_10] : memref<1x1xf32, #tpu.memory_space<smem>>
    %14 = vector.broadcast %13 : f32 to vector<1x128xf32>
    %15 = arith.addf %12, %14 : vector<1x128xf32>
    %c0_11 = arith.constant 0 : index
    %c0_12 = arith.constant 0 : index
    %c0_13 = arith.constant 0 : index
    %16 = vector.load %arg6[%c0_11, %c0_12, %c0_13] : memref<1x1x128xf32, #tpu.memory_space<vmem>>, vector<1x1x128xf32>
    %17 = vector.shape_cast %16 : vector<1x1x128xf32> to vector<1x128xf32>
    %18 = vector.shape_cast %15 : vector<1x128xf32> to vector<1x1x128xf32>
    tpu.vector_store %arg6[%c0_11, %c0_12, %c0_13], %18 {strides = array<i32>} : memref<1x1x128xf32, #tpu.memory_space<vmem>>, vector<1x1x128xf32>,
    return
  }
  func.func @transform_0(%arg0: i32) -> (i32, i32) {
    %c0_i32 = arith.constant 0 : i32
    %c0_i32_0 = arith.constant 0 : i32
    return %c0_i32, %arg0 : i32, i32
  }
  func.func @transform_1(%arg0: i32) -> (i32, i32) {
    %c0_i32 = arith.constant 0 : i32
    %c0_i32_0 = arith.constant 0 : i32
    %c0_i32_1 = arith.constant 0 : i32
    return %c0_i32, %c0_i32_0 : i32, i32
  }
  func.func @transform_2(%arg0: i32) -> (i32, i32) {
    %c0_i32 = arith.constant 0 : i32
    %c0_i32_0 = arith.constant 0 : i32
    %c0_i32_1 = arith.constant 0 : i32
    return %c0_i32, %c0_i32_0 : i32, i32
  }
  func.func @transform_3(%arg0: i32) -> (i32, i32) {
    %c0_i32 = arith.constant 0 : i32
    %c0_i32_0 = arith.constant 0 : i32
    %c0_i32_1 = arith.constant 0 : i32
    return %c0_i32, %c0_i32_0 : i32, i32
  }
  func.func @transform_4(%arg0: i32) -> (i32, i32) {
    %c0_i32 = arith.constant 0 : i32
    %c0_i32_0 = arith.constant 0 : i32
    %c0_i32_1 = arith.constant 0 : i32
    return %c0_i32, %c0_i32_0 : i32, i32
  }
  func.func @transform_5(%arg0: i32) -> (i32, i32, i32) {
    %c0_i32 = arith.constant 0 : i32
    %c0_i32_0 = arith.constant 0 : i32
    %c0_i32_1 = arith.constant 0 : i32
    return %arg0, %c0_i32, %c0_i32_0 : i32, i32, i32
  }
}

</mosaic_0001>

<bundles_post_ra>
// kernel: tpu_custom_call.1
= control target key start
LH: loop header
LB: loop body
LE: loop exit
PB: predicated region body
PF: predicated region fallthrough
CT: control target
= control target key end

     0   :  { %vm64_vm0 = vcmask 1043456   ;;  %vm51_vm1 = vcmask 31744   ;;  %s346_s0 = inlined_call_operand.vmem [shape: f32[4,128], index: 0, kind: input, shape index: {}]   ;;  %s347_s1 = inlined_call_operand.vmem [shape: f32[32,4], index: 1, kind: input, shape index: {}]   ;;  %s348_s2 = inlined_call_operand.vmem [shape: f32[32,1], index: 2, kind: input, shape index: {}]   ;;  %s349_s3 = inlined_call_operand.vmem [shape: f32[32,1], index: 3, kind: input, shape index: {}]   ;;  %s350_s4 = inlined_call_operand.<no memory space> [shape: f32[1,1], index: 4, kind: input, shape index: {}]   ;;  %s351_s5 = inlined_call_operand.hbm [shape: f32[1,1,128], index: 5, kind: output, shape index: {}]  }
   0x1   :  { %v26_v0 = vld [vmem:[%s346_s0] sm:$0xf]  ;;  %v24_v2 = vld [vmem:[%s347_s1 + $0x10] sm:$0xff]  ;;  %v23_v3 = vld [vmem:[%s347_s1 + $0x8] sm:$0xff] }
   0x2   :  { %v22_v1 = vld [vmem:[%s347_s1] sm:$0xff]  ;;  %222 = vmatprep.subr.msk.mxu0 %vm64_vm0, %v26_v0  ;;  %230 = vmatprep.subr.msk.mxu1 %vm64_vm0, %v26_v0  ;;  %v25_v4 = vld [vmem:[%s347_s1 + $0x18] sm:$0xff]  ;;  %v29_v6 = vld [vmem:[%s348_s2 + $0x10] sm:$0xff] }
   0x3   :  { %223 = vmatpush3.msk.msra.mxu0 %vm64_vm0, %v26_v0  ;;  %231 = vmatpush3.msk.msra.mxu1 %vm64_vm0, %v26_v0  ;;  %v27_v5 = vld [vmem:[%s348_s2] sm:$0xff] }
   0x4   :  { %224 = vmatprep.mubr.msk.f32.mxu0 %vm51_vm1, %v22_v1  ;;  %227 = vmatprep.mubr.msk.f32.mxu1 %vm51_vm1, %v24_v2 }
   0x5   :  { %225 = vmatmul.mubr.msk.f32.vlgmr.msra.gmra.mrb[0].mxu0 %vm51_vm1, %v23_v3  ;;  %228 = vmatmul.mubr.msk.f32.vlgmr.msra.gmra.mrb[0].mxu1 %vm51_vm1, %v25_v4 }
   0x6   :  { %11 = vsyncpa [#allocation4], 0  ;;  %v260_v7 = vmov 0   ;;  %v28_v8 = vld [vmem:[%s348_s2 + $0x8] sm:$0xff]  ;;  %v30_v9 = vld [vmem:[%s348_s2 + $0x18] sm:$0xff]  ;;  %v195_v46 = vstv %s350_s4  ;;  %s261_s17 = smov [#allocation3]  }
   0x7   :  { %234 = vset.pattern.permute.xlu0 %v260_v7  ;;  %235 = vset.pattern.permute.xlu1 %v260_v7  ;;  %v157_v10 = vld [vmem:[%s349_s3] sm:$0xff]  ;;  %v158_v11 = vld [vmem:[%s349_s3 + $0x8] sm:$0xff]  ;;  %v159_v12 = vld [vmem:[%s349_s3 + $0x10] sm:$0xff]  ;;  %s204_s18 = sshll.u32 %s261_s17, 4  ;;  %s205_s18 = int_to_ptr.vmem [resolvable:$true] %s204_s18 }
   0x8   :  { %33 = vperm.xlu0 %234, %v27_v5   ;;  %43 = vperm.xlu1 %235, %v29_v6   ;;  %v160_v13 = vld [vmem:[%s349_s3 + $0x18] sm:$0xff]  ;;  %s236_s19 = scalar_lea.vmem %s205_s18, 16  ;;  %s240_s20 = scalar_lea.vmem %s205_s18, 32 }
   0x9   :  { %p237_p0 = scmp.ne.s32.totalorder %s205_s18, %s236_s19  ;;  %p241_p1 = scmp.lt.s32.totalorder %s205_s18, %s205_s18 }
   0xa   :  { %p242_p2 = scmp.lt.s32.totalorder %s240_s20, %s236_s19 }
   0xc   :  { %38 = vperm.xlu0 %234, %v28_v8   ;;  %48 = vperm.xlu1 %235, %v30_v9   ;;  %p243_p3 = por %p242_p2, %p241_p1 }
   0xe   :  { %p244_p4 = pnand %p243_p3, %p237_p0 }
  0x10   :  { %163 = vperm.xlu0 %234, %v157_v10   ;;  %168 = vperm.xlu1 %235, %v158_v11  }
  0x14   :  { %173 = vperm.xlu0 %234, %v159_v12   ;;  %178 = vperm.xlu1 %235, %v160_v13  }
  0x87   :  { %v34_v14 = vpop.permute.xlu0 %33  ;;  %v44_v15 = vpop.permute.xlu1 %43 }
  0x8b   :  { %v39_v16 = vpop.permute.xlu0 %38  ;;  %v49_v17 = vpop.permute.xlu1 %48 }
  0x8f   :  { %v164_v18 = vpop.permute.xlu0 %163  ;;  %v169_v27 = vpop.permute.xlu1 %168 }
  0x93   :  { %v174_v34 = vpop.permute.xlu0 %173  ;;  %v179_v37 = vpop.permute.xlu1 %178 }
  0xd8   :  { %v226_v19 = vpop.f32.mrb[0].mxu0  ;;  %v229_v20 = vpop.f32.mrb[0].mxu1 }
  0xd9   :  { %v140_v21 = vadd.f32 %v226_v19, %v39_v16  ;;  %v134_v22 = vpop.f32.mrb[1].mxu0  ;;  %v144_v23 = vpop.f32.mrb[1].mxu1  ;;  %v150_v24 = vadd.f32 %v229_v20, %v49_v17 }
  0xda   :  { %v135_v25 = vadd.f32 %v134_v22, %v34_v14  ;;  %v145_v26 = vadd.f32 %v144_v23, %v44_v15 }
  0xdb   :  { %v154_v28 = vmax.f32 %v140_v21, 0.0  ;;  %v156_v32 = vmax.f32 %v150_v24, 0.0 }
  0xdc   :  { %v153_v29 = vmax.f32 %v135_v25, 0.0  ;;  %v155_v30 = vmax.f32 %v145_v26, 0.0 }
  0xdd   :  { %v182_v31 = vmul.f32 %v169_v27, %v154_v28  ;;  %v184_v38 = vmul.f32 %v179_v37, %v156_v32 }
  0xde   :  { %v181_v33 = vmul.f32 %v164_v18, %v153_v29  ;;  %v183_v36 = vmul.f32 %v174_v34, %v155_v30 }
  0xe0   :  { %v185_v35 = vadd.f32 %v182_v31, %v181_v33 }
  0xe2   :  { %v186_v39 = vadd.f32 %v185_v35, %v183_v36 }
  0xe4   :  { %v187_v40 = vadd.f32 %v186_v39, %v184_v38 }
  0xe6   :  { %v188_v41 = vrot.slane %v187_v40, 4 }
  0xe8   :  { %v189_v42 = vadd.f32 %v188_v41, %v187_v40 }
  0xea   :  { %v190_v43 = vrot.slane %v189_v42, 2 }
  0xec   :  { %v191_v44 = vadd.f32 %v190_v43, %v189_v42 }
  0xee   :  { %v192_v45 = vrot.slane %v191_v44, 1 }
  0xf0   :  { %v193_v47 = vadd.f32 %v192_v45, %v191_v44 }
  0xf2   :  { %v196_v48 = vadd.f32 %v195_v46, %v193_v47 }
  0xf4   :  { %197 = vst [vmem:[#allocation3] sm:$0x1] %v196_v48 }
  0xf5   :  { %247 = shalt.err (!%p244_p4)
}
  0xf6   :  { %s248_s23 = scalar_lea.hbm %s351_s5, 16 }
  0xf7   :  { %p249_p5 = scmp.ne.s32.totalorder %s351_s5, %s248_s23  ;;  %p252_p6 = scmp.lt.u32.totalorder %s248_s23, %s351_s5 }
  0xf9   :  { %p254_p7 = pnand %p252_p6, %p249_p5 }
  0xfb   :  { %257 = shalt.err (!%p254_p7)
}
  0xfc   :  { %207 = dma.vmem_to_hbm [thread:$0]  %s205_s18, 16, %s351_s5, [#allocation4]  }
  0xfd   :  { %258 = dma.done.wait [#allocation4], 16  }
  0xfe   :  { %259 = vsyncadd [#allocation4], 4294967280 }
  0xff   :  { %211 = vsyncpa [#allocation4], 1 }

</bundles_post_ra>
